<compile_context>
chip_gen: v7x
topology: tpu7x:2x2x1
jax: 0.10.0
libtpu: 0.0.40
codegen_flags: <defaults>
</compile_context>

<pallas_src>
import functools

import jax
import jax.numpy as jnp
from jax.experimental import pallas as pl
from jax.experimental.pallas import tpu as pltpu

VMEM_SPEC = pl.BlockSpec(memory_space=pltpu.MemorySpace.VMEM)

FEAT_DROP_PROB = 0.3
EDGE_DROP_PROB = 0.3


# ---------------------------------------------------------------------------
# Pallas kernels
# ---------------------------------------------------------------------------
def _fused_encoder_kernel(a_ref, a2_ref, xs_ref, w1_ref, b1_ref, w2_ref, b2_ref, z_ref):
    """Fused: normalize A and A2, then two GCN layers for 3 stacked views.

    a_ref  : [N, N]  raw adjacency (+ self loops) shared by views 0 (z) and 1 (z1)
    a2_ref : [N, N]  raw adjacency (+ self loops) for the edge-dropped view 2 (z2)
    xs_ref : [3N, F] node features stacked per view (x, x_feature_masked, x)
    z_ref  : [3N, H] stacked outputs (z, z1, z2)
    """
    n = a_ref.shape[0]
    hid = w1_ref.shape[1]

    def normalize(a):
        # A_hat = D^{-1/2} A D^{-1/2}, deg_i = sum_j A[i, j]
        deg = jnp.sum(a, axis=-1, keepdims=True)                    # [N, 1]
        dinv = jnp.where(deg > 0, jax.lax.rsqrt(deg), 0.0)          # [N, 1]
        return (dinv * a) * jnp.transpose(dinv)                     # [N, N]

    # Normalize both adjacencies once, keep bf16 copies for the MXU.
    a_hat = normalize(a_ref[...]).astype(jnp.bfloat16)
    a2_hat = normalize(a2_ref[...]).astype(jnp.bfloat16)

    xs = xs_ref[...].astype(jnp.bfloat16)                           # [3N, F]
    w1 = w1_ref[...].astype(jnp.bfloat16)                           # [F, H]
    w2 = w2_ref[...].astype(jnp.bfloat16)                           # [H, H]

    def gcn_layer(h_in_bf16, w_bf16, bias, apply_relu):
        # Feature transform for all three views in one stacked matmul.
        h = jnp.dot(h_in_bf16, w_bf16, preferred_element_type=jnp.float32)  # [3N, H]
        h0, h1, h2 = h[:n], h[n:2 * n], h[2 * n:]
        # Views 0 & 1 share A_hat -> aggregate them together on the lane axis.
        h01 = jnp.concatenate([h0, h1], axis=-1).astype(jnp.bfloat16)        # [N, 2H]
        ah01 = jnp.dot(a_hat, h01, preferred_element_type=jnp.float32)       # [N, 2H]
        ah2 = jnp.dot(a2_hat, h2.astype(jnp.bfloat16),
                      preferred_element_type=jnp.float32)                    # [N, H]
        out = jnp.concatenate([ah01[:, :hid], ah01[:, hid:], ah2], axis=0)   # [3N, H]
        out = out + bias
        if apply_relu:
            out = jnp.maximum(out, 0.0)
        return out

    l1 = gcn_layer(xs, w1, b1_ref[...], apply_relu=True)             # [3N, H] f32
    l2 = gcn_layer(l1.astype(jnp.bfloat16), w2, b2_ref[...], apply_relu=False)
    z_ref[...] = l2.astype(z_ref.dtype)


def _project_kernel(z_ref, w1t_ref, b1_ref, w2t_ref, b2_ref, o_ref):
    """out = fc2(ELU(fc1(z))), weights pre-transposed to [in, out] by the wrapper."""
    h = jnp.dot(z_ref[...].astype(jnp.bfloat16), w1t_ref[...].astype(jnp.bfloat16),
                preferred_element_type=jnp.float32) + b1_ref[...]
    # ELU (alpha=1): expm1 on the clamped argument avoids exp overflow on the
    # positive branch and is exact near 0.
    h = jnp.where(h > 0, h, jnp.expm1(jnp.minimum(h, 0.0)))
    o = jnp.dot(h.astype(jnp.bfloat16), w2t_ref[...].astype(jnp.bfloat16),
                preferred_element_type=jnp.float32) + b2_ref[...]
    o_ref[...] = o.astype(o_ref.dtype)


# ---------------------------------------------------------------------------
# Pallas wrappers
# ---------------------------------------------------------------------------
def fused_gcn_encoder(params, a, a2, xs):
    n3 = xs.shape[0]
    hid = params["w1"].shape[1]
    return pl.pallas_call(
        _fused_encoder_kernel,
        out_shape=jax.ShapeDtypeStruct((n3, hid), jnp.float32),
        in_specs=[VMEM_SPEC] * 7,
        out_specs=VMEM_SPEC,
    )(a, a2, xs, params["w1"], params["b1"], params["w2"], params["b2"])


@jax.jit
def project(z, fc1_w, fc1_b, fc2_w, fc2_b):
    # Pre-transpose at trace time (free); keeps the MXU feed layout clean.
    w1t = fc1_w.T   # [H, P]
    w2t = fc2_w.T   # [P, H]
    n = z.shape[0]
    hidden_dim = fc2_w.shape[0]
    return pl.pallas_call(
        _project_kernel,
        out_shape=jax.ShapeDtypeStruct((n, hidden_dim), jnp.float32),
        in_specs=[VMEM_SPEC] * 5,
        out_specs=VMEM_SPEC,
    )(z, w1t, fc1_b, w2t, fc2_b)


# ---------------------------------------------------------------------------
# Glue: dense adjacency, deterministic augmentors, Encoder.forward (jitted)
# ---------------------------------------------------------------------------
def build_adj(edge_index, edge_weight, num_nodes):
    # Scatter-build of the dense adjacency (no clean Pallas TPU scatter) + self loops.
    src, dst = edge_index[0], edge_index[1]
    a = jnp.zeros((num_nodes, num_nodes), jnp.float32)
    a = a.at[dst, src].add(edge_weight)              # message src -> dst
    a = a + jnp.eye(num_nodes, dtype=jnp.float32)    # self loops, weight 1
    return a


@jax.jit
def _encoder_forward_jit(params, x, edge_index, edge_weight, key_feat, key_edge):
    n = x.shape[0]

    # aug1: feature masking (does not touch edges)
    feat_mask = (jax.random.uniform(key_feat, (1, x.shape[1])) >= FEAT_DROP_PROB
                 ).astype(x.dtype)
    x1 = x * feat_mask

    # aug2: edge dropping (does not touch features)
    edge_keep = (jax.random.uniform(key_edge, edge_weight.shape) >= EDGE_DROP_PROB
                 ).astype(edge_weight.dtype)
    ew2 = edge_weight * edge_keep

    # A is shared by the z and z1 views; A2 only for the edge-dropped view.
    a = build_adj(edge_index, edge_weight, n)
    a2 = build_adj(edge_index, ew2, n)

    # Stack the three views on the sublane axis for one fused kernel.
    xs = jnp.concatenate([x, x1, x], axis=0)         # [3N, F]
    z_all = fused_gcn_encoder(params, a, a2, xs)     # [3N, H]
    return z_all[:n], z_all[n:2 * n], z_all[2 * n:]


def encoder_forward(params, x, edge_index, edge_weight=None,
                    key_feat=jax.random.PRNGKey(1), key_edge=jax.random.PRNGKey(2)):
    """Mirrors Encoder.forward: returns (z, z1, z2)."""
    if edge_weight is None:
        edge_weight = jnp.ones((edge_index.shape[1],), jnp.float32)
    return _encoder_forward_jit(params, x, edge_index, edge_weight, key_feat, key_edge)


# ---------------------------------------------------------------------------
# Main
# ---------------------------------------------------------------------------
if __name__ == "__main__":
    N, F_IN, HIDDEN, PROJ, E = 16, 16, 32, 8, 32

    key = jax.random.PRNGKey(0)
    k = jax.random.split(key, 10)

    # Deterministic parameter init (fan-in scaled, PyTorch-default-like).
    def uinit(kk, shape, fan_in):
        bound = 1.0 / jnp.sqrt(fan_in)
        return jax.random.uniform(kk, shape, jnp.float32, -bound, bound)

    gcn_params = {
        "w1": uinit(k[0], (F_IN, HIDDEN), F_IN),
        "b1": uinit(k[1], (1, HIDDEN), F_IN),
        "w2": uinit(k[2], (HIDDEN, HIDDEN), HIDDEN),
        "b2": uinit(k[3], (1, HIDDEN), HIDDEN),
    }
    fc1_w = uinit(k[4], (PROJ, HIDDEN), HIDDEN)   # torch.nn.Linear(hidden, proj).weight
    fc1_b = uinit(k[5], (1, PROJ), HIDDEN)
    fc2_w = uinit(k[6], (HIDDEN, PROJ), PROJ)     # torch.nn.Linear(proj, hidden).weight
    fc2_b = uinit(k[7], (1, HIDDEN), PROJ)

    # Inputs: node features + random directed edges.
    x = jax.random.normal(k[8], (N, F_IN), jnp.float32)
    edge_index = jax.random.randint(k[9], (2, E), 0, N, jnp.int32)

    z, z1, z2 = encoder_forward(gcn_params, x, edge_index, None,
                                jax.random.PRNGKey(1), jax.random.PRNGKey(2))
    p = project(z, fc1_w, fc1_b, fc2_w, fc2_b)

    jax.block_until_ready((z, z1, z2, p))
    assert z.shape == (N, HIDDEN) and z1.shape == (N, HIDDEN) and z2.shape == (N, HIDDEN)
    assert p.shape == (N, HIDDEN)
    assert all(bool(jnp.all(jnp.isfinite(t))) for t in (z, z1, z2, p))
    print("KERNEL_OK")
</pallas_src>

<mosaic_0001>
module attributes {stable_mosaic.version = 11 : i64} {
  func.func private @main(%arg0: i32) attributes {dimension_semantics = [#tpu.dimension_semantics<core_parallel>], iteration_bounds = array<i64: 2>, tpu.core_type = #tpu.core_type<sc_scalar_subcore>, window_params = []} {
    return
  }
}

module attributes {stable_mosaic.version = 11 : i64} {
  func.func private @main(%arg0: i32) attributes {dimension_semantics = [#tpu.dimension_semantics<core_parallel>], iteration_bounds = array<i64: 2>, tpu.core_type = #tpu.core_type<sc_scalar_subcore>, window_params = []} {
    return
  }
}

module attributes {stable_mosaic.version = 11 : i64} {
  func.func @_fused_encoder_kernel(%arg0: memref<16x16xf32, #tpu.memory_space<vmem>>, %arg1: memref<16x16xf32, #tpu.memory_space<vmem>>, %arg2: memref<48x16xf32, #tpu.memory_space<vmem>>, %arg3: memref<16x32xf32, #tpu.memory_space<vmem>>, %arg4: memref<1x32xf32, #tpu.memory_space<vmem>>, %arg5: memref<32x32xf32, #tpu.memory_space<vmem>>, %arg6: memref<1x32xf32, #tpu.memory_space<vmem>>, %arg7: memref<48x32xf32, #tpu.memory_space<vmem>>) attributes {dimension_semantics = [], scalar_prefetch = 0 : i64, scratch_operands = 0 : i64, tpu.core_type = #tpu.core_type<tc>} {
    %c0 = arith.constant 0 : index
    %c0_0 = arith.constant 0 : index
    %0 = vector.load %arg0[%c0, %c0_0] : memref<16x16xf32, #tpu.memory_space<vmem>>, vector<16x16xf32>
    %cst = arith.constant dense<0.000000e+00> : vector<16xf32>
    %1 = vector.multi_reduction <add>, %0, %cst [1] : vector<16x16xf32> to vector<16xf32>
    %2 = vector.shape_cast %1 : vector<16xf32> to vector<16x1xf32>
    %cst_1 = arith.constant 0.000000e+00 : f32
    %3 = vector.broadcast %cst_1 : f32 to vector<16x1xf32>
    %4 = arith.cmpf ogt, %2, %3 : vector<16x1xf32>
    %5 = math.rsqrt %2 : vector<16x1xf32>
    %cst_2 = arith.constant 0.000000e+00 : f32
    %6 = vector.broadcast %cst_2 : f32 to vector<16x1xf32>
    %7 = arith.select %4, %5, %6 : vector<16x1xi1>, vector<16x1xf32>
    %8 = vector.broadcast %7 : vector<16x1xf32> to vector<16x16xf32>
    %9 = arith.mulf %8, %0 : vector<16x16xf32>
    %10 = tpu.transpose %7, [1, 0] : vector<16x1xf32> -> vector<1x16xf32>
    %11 = vector.broadcast %10 : vector<1x16xf32> to vector<16x16xf32>
    %12 = arith.mulf %9, %11 : vector<16x16xf32>
    %13 = arith.truncf %12 : vector<16x16xf32> to vector<16x16xbf16>
    %c0_3 = arith.constant 0 : index
    %c0_4 = arith.constant 0 : index
    %14 = vector.load %arg1[%c0_3, %c0_4] : memref<16x16xf32, #tpu.memory_space<vmem>>, vector<16x16xf32>
    %cst_5 = arith.constant dense<0.000000e+00> : vector<16xf32>
    %15 = vector.multi_reduction <add>, %14, %cst_5 [1] : vector<16x16xf32> to vector<16xf32>
    %16 = vector.shape_cast %15 : vector<16xf32> to vector<16x1xf32>
    %cst_6 = arith.constant 0.000000e+00 : f32
    %17 = vector.broadcast %cst_6 : f32 to vector<16x1xf32>
    %18 = arith.cmpf ogt, %16, %17 : vector<16x1xf32>
    %19 = math.rsqrt %16 : vector<16x1xf32>
    %cst_7 = arith.constant 0.000000e+00 : f32
    %20 = vector.broadcast %cst_7 : f32 to vector<16x1xf32>
    %21 = arith.select %18, %19, %20 : vector<16x1xi1>, vector<16x1xf32>
    %22 = vector.broadcast %21 : vector<16x1xf32> to vector<16x16xf32>
    %23 = arith.mulf %22, %14 : vector<16x16xf32>
    %24 = tpu.transpose %21, [1, 0] : vector<16x1xf32> -> vector<1x16xf32>
    %25 = vector.broadcast %24 : vector<1x16xf32> to vector<16x16xf32>
    %26 = arith.mulf %23, %25 : vector<16x16xf32>
    %27 = arith.truncf %26 : vector<16x16xf32> to vector<16x16xbf16>
    %c0_8 = arith.constant 0 : index
    %c0_9 = arith.constant 0 : index
    %28 = vector.load %arg2[%c0_8, %c0_9] : memref<48x16xf32, #tpu.memory_space<vmem>>, vector<48x16xf32>
    %29 = arith.truncf %28 : vector<48x16xf32> to vector<48x16xbf16>
    %c0_10 = arith.constant 0 : index
    %c0_11 = arith.constant 0 : index
    %30 = vector.load %arg3[%c0_10, %c0_11] : memref<16x32xf32, #tpu.memory_space<vmem>>, vector<16x32xf32>
    %31 = arith.truncf %30 : vector<16x32xf32> to vector<16x32xbf16>
    %c0_12 = arith.constant 0 : index
    %c0_13 = arith.constant 0 : index
    %32 = vector.load %arg5[%c0_12, %c0_13] : memref<32x32xf32, #tpu.memory_space<vmem>>, vector<32x32xf32>
    %33 = arith.truncf %32 : vector<32x32xf32> to vector<32x32xbf16>
    %c0_14 = arith.constant 0 : index
    %c0_15 = arith.constant 0 : index
    %34 = vector.load %arg4[%c0_14, %c0_15] : memref<1x32xf32, #tpu.memory_space<vmem>>, vector<1x32xf32>
    %cst_16 = arith.constant dense<0.000000e+00> : vector<48x32xf32>
    %35 = tpu.matmul %29, %31, %cst_16 {dimension_numbers = #tpu.dot_dimension_numbers<[1], [0], [0], [1], [0, 0, 1, 1], [], []>} : vector<48x16xbf16>, vector<16x32xbf16>, vector<48x32xf32> -> vector<48x32xf32>
    %36 = vector.extract_strided_slice %35 {offsets = [0, 0], sizes = [16, 32], strides = [1, 1]} : vector<48x32xf32> to vector<16x32xf32>
    %37 = vector.extract_strided_slice %35 {offsets = [16, 0], sizes = [16, 32], strides = [1, 1]} : vector<48x32xf32> to vector<16x32xf32>
    %38 = vector.extract_strided_slice %35 {offsets = [32, 0], sizes = [16, 32], strides = [1, 1]} : vector<48x32xf32> to vector<16x32xf32>
    %39 = tpu.concatenate %36, %37 in 1 : vector<16x32xf32>, vector<16x32xf32> -> vector<16x64xf32>
    %40 = arith.truncf %39 : vector<16x64xf32> to vector<16x64xbf16>
    %cst_17 = arith.constant dense<0.000000e+00> : vector<16x64xf32>
    %41 = tpu.matmul %13, %40, %cst_17 {dimension_numbers = #tpu.dot_dimension_numbers<[1], [0], [0], [1], [0, 0, 1, 1], [], []>} : vector<16x16xbf16>, vector<16x64xbf16>, vector<16x64xf32> -> vector<16x64xf32>
    %42 = arith.truncf %38 : vector<16x32xf32> to vector<16x32xbf16>
    %cst_18 = arith.constant dense<0.000000e+00> : vector<16x32xf32>
    %43 = tpu.matmul %27, %42, %cst_18 {dimension_numbers = #tpu.dot_dimension_numbers<[1], [0], [0], [1], [0, 0, 1, 1], [], []>} : vector<16x16xbf16>, vector<16x32xbf16>, vector<16x32xf32> -> vector<16x32xf32>
    %44 = vector.extract_strided_slice %41 {offsets = [0, 0], sizes = [16, 32], strides = [1, 1]} : vector<16x64xf32> to vector<16x32xf32>
    %45 = vector.extract_strided_slice %41 {offsets = [0, 32], sizes = [16, 32], strides = [1, 1]} : vector<16x64xf32> to vector<16x32xf32>
    %46 = tpu.concatenate %44, %45, %43 in 0 : vector<16x32xf32>, vector<16x32xf32>, vector<16x32xf32> -> vector<48x32xf32>
    %47 = vector.broadcast %34 : vector<1x32xf32> to vector<48x32xf32>
    %48 = arith.addf %46, %47 : vector<48x32xf32>
    %cst_19 = arith.constant 0.000000e+00 : f32
    %49 = vector.broadcast %cst_19 : f32 to vector<48x32xf32>
    %50 = arith.maximumf %48, %49 : vector<48x32xf32>
    %51 = arith.truncf %50 : vector<48x32xf32> to vector<48x32xbf16>
    %c0_20 = arith.constant 0 : index
    %c0_21 = arith.constant 0 : index
    %52 = vector.load %arg6[%c0_20, %c0_21] : memref<1x32xf32, #tpu.memory_space<vmem>>, vector<1x32xf32>
    %cst_22 = arith.constant dense<0.000000e+00> : vector<48x32xf32>
    %53 = tpu.matmul %51, %33, %cst_22 {dimension_numbers = #tpu.dot_dimension_numbers<[1], [0], [0], [1], [0, 0, 1, 1], [], []>} : vector<48x32xbf16>, vector<32x32xbf16>, vector<48x32xf32> -> vector<48x32xf32>
    %54 = vector.extract_strided_slice %53 {offsets = [0, 0], sizes = [16, 32], strides = [1, 1]} : vector<48x32xf32> to vector<16x32xf32>
    %55 = vector.extract_strided_slice %53 {offsets = [16, 0], sizes = [16, 32], strides = [1, 1]} : vector<48x32xf32> to vector<16x32xf32>
    %56 = vector.extract_strided_slice %53 {offsets = [32, 0], sizes = [16, 32], strides = [1, 1]} : vector<48x32xf32> to vector<16x32xf32>
    %57 = tpu.concatenate %54, %55 in 1 : vector<16x32xf32>, vector<16x32xf32> -> vector<16x64xf32>
    %58 = arith.truncf %57 : vector<16x64xf32> to vector<16x64xbf16>
    %cst_23 = arith.constant dense<0.000000e+00> : vector<16x64xf32>
    %59 = tpu.matmul %13, %58, %cst_23 {dimension_numbers = #tpu.dot_dimension_numbers<[1], [0], [0], [1], [0, 0, 1, 1], [], []>} : vector<16x16xbf16>, vector<16x64xbf16>, vector<16x64xf32> -> vector<16x64xf32>
    %60 = arith.truncf %56 : vector<16x32xf32> to vector<16x32xbf16>
    %cst_24 = arith.constant dense<0.000000e+00> : vector<16x32xf32>
    %61 = tpu.matmul %27, %60, %cst_24 {dimension_numbers = #tpu.dot_dimension_numbers<[1], [0], [0], [1], [0, 0, 1, 1], [], []>} : vector<16x16xbf16>, vector<16x32xbf16>, vector<16x32xf32> -> vector<16x32xf32>
    %62 = vector.extract_strided_slice %59 {offsets = [0, 0], sizes = [16, 32], strides = [1, 1]} : vector<16x64xf32> to vector<16x32xf32>
    %63 = vector.extract_strided_slice %59 {offsets = [0, 32], sizes = [16, 32], strides = [1, 1]} : vector<16x64xf32> to vector<16x32xf32>
    %64 = tpu.concatenate %62, %63, %61 in 0 : vector<16x32xf32>, vector<16x32xf32>, vector<16x32xf32> -> vector<48x32xf32>
    %65 = vector.broadcast %52 : vector<1x32xf32> to vector<48x32xf32>
    %66 = arith.addf %64, %65 : vector<48x32xf32>
    %c0_25 = arith.constant 0 : index
    %c0_26 = arith.constant 0 : index
    %67 = vector.load %arg7[%c0_25, %c0_26] : memref<48x32xf32, #tpu.memory_space<vmem>>, vector<48x32xf32>
    tpu.vector_store %arg7[%c0_25, %c0_26], %66 {strides = array<i32>} : memref<48x32xf32, #tpu.memory_space<vmem>>, vector<48x32xf32>,
    return
  }
}

</mosaic_0001>

<bundles_post_ra>
// kernel: _encoder_forward_jit.1
= control target key start
LH: loop header
LB: loop body
LE: loop exit
PB: predicated region body
PF: predicated region fallthrough
CT: control target
= control target key end

     0   :  { %12 = vsyncpa [#allocation3], 0  ;;  %s944_s0 = inlined_call_operand.hbm [shape: f32[16,16], index: 0, kind: input, shape index: {}]   ;;  %s945_s1 = inlined_call_operand.hbm [shape: f32[16,16], index: 1, kind: input, shape index: {}]   ;;  %s946_s2 = inlined_call_operand.vmem [shape: f32[48,16], index: 2, kind: input, shape index: {}]   ;;  %s947_s3 = inlined_call_operand.vmem [shape: f32[16,32], index: 3, kind: input, shape index: {}]   ;;  %s948_s4 = inlined_call_operand.vmem [shape: f32[1,32], index: 4, kind: input, shape index: {}]   ;;  %s949_s5 = inlined_call_operand.vmem [shape: f32[32,32], index: 5, kind: input, shape index: {}]   ;;  %s950_s6 = inlined_call_operand.vmem [shape: f32[1,32], index: 6, kind: input, shape index: {}]   ;;  %s951_s7 = inlined_call_operand.vmem [shape: f32[48,32], index: 7, kind: output, shape index: {}]  }
   0x1   :  { %13 = vsyncpa [#allocation5], 0  ;;  %s731_s24 = smov [#allocation2]   ;;  %s683_s28 = scalar_lea.hbm %s944_s0, 256 }
   0x2   :  { %s19_s25 = sshll.u32 %s731_s24, 4  ;;  %p684_p0 = scmp.ne.s32.totalorder %s944_s0, %s683_s28  ;;  %s20_s25 = int_to_ptr.vmem [resolvable:$true] %s19_s25 }
   0x3   :  { %p687_p1 = scmp.lt.u32.totalorder %s683_s28, %s944_s0 }
   0x5   :  { %p689_p2 = pnand %p687_p1, %p684_p0 }
   0x7   :  { %692 = shalt.err (!%p689_p2)
}
   0x8   :  { %s693_s10 = scalar_lea.vmem %s20_s25, 256  ;;  %p698_p4 = scmp.lt.s32.totalorder %s20_s25, %s20_s25 }
   0x9   :  { %p694_p3 = scmp.ne.s32.totalorder %s20_s25, %s693_s10  ;;  %p699_p5 = scmp.lt.s32.totalorder %s693_s10, %s693_s10 }
   0xb   :  { %p700_p6 = por %p699_p5, %p698_p4 }
   0xd   :  { %p701_p7 = pnand %p700_p6, %p694_p3 }
   0xf   :  { %704 = shalt.err (!%p701_p7)
}
  0x10   :  { %s732_s11 = smov 128   ;;  %s733_s12 = smov 8  }
  0x11   :  { %25 = dma.hbm_to_vmem [thread:$0]  %s944_s0, 256, %s20_s25, [#allocation3], %s732_s11, %s732_s11, %s733_s12  }
  0x12   :  { %s734_s15 = smov [#allocation4]   ;;  %s705_s19 = scalar_lea.hbm %s945_s1, 256 }
  0x13   :  { %s31_s16 = sshll.u32 %s734_s15, 4  ;;  %p706_p8 = scmp.ne.s32.totalorder %s945_s1, %s705_s19  ;;  %s32_s16 = int_to_ptr.vmem [resolvable:$true] %s31_s16 }
  0x14   :  { %p709_p9 = scmp.lt.u32.totalorder %s705_s19, %s945_s1 }
  0x16   :  { %p711_p10 = pnand %p709_p9, %p706_p8 }
  0x18   :  { %714 = shalt.err (!%p711_p10)
}
  0x19   :  { %s715_s24 = scalar_lea.vmem %s32_s16, 256  ;;  %p720_p12 = scmp.lt.s32.totalorder %s32_s16, %s32_s16 }
  0x1a   :  { %p716_p11 = scmp.ne.s32.totalorder %s32_s16, %s715_s24  ;;  %p721_p13 = scmp.lt.s32.totalorder %s715_s24, %s715_s24 }
  0x1c   :  { %p722_p0 = por %p721_p13, %p720_p12 }
  0x1e   :  { %p723_p1 = pnand %p722_p0, %p716_p11 }
  0x20   :  { %726 = shalt.err (!%p723_p1)
}
  0x21   :  { %37 = dma.hbm_to_vmem [thread:$0]  %s945_s1, 256, %s32_s16, [#allocation5], %s732_s11, %s732_s11, %s733_s12  }
  0x22   :  { %727 = dma.done.wait [#allocation3], 256  }
  0x23   :  { %728 = vsyncadd [#allocation3], 4294967040 }
  0x24   :  { %729 = dma.done.wait [#allocation5], 256  }
  0x25   :  { %730 = vsyncadd [#allocation5], 4294967040  ;;  %v735_v0 = vmov 0.0   ;;  %vm736_vm0 = vmmov 0   ;;  %v175_v1 = vld [vmem:[%s947_s3] sm:$0xff]  ;;  %v176_v2 = vld [vmem:[%s947_s3 + $0x8] sm:$0xff]  ;;  %v104_v48 = vlaneseq }
  0x26   :  { %603 = vmatprep.subr.bf16.mxu0 %v735_v0  ;;  %605 = vmatprep.mubr.msk.bf16.mxu0 %vm736_vm0, %v735_v0  ;;  %v166_v3 = vld [vmem:[%s946_s2] sm:$0xff]  ;;  %v177_v4 = vpack.c.bf16 %v176_v2, %v175_v1  ;;  %v167_v5 = vld [vmem:[%s946_s2 + $0x8] sm:$0xff]  ;;  %vm57_vm1 = vcmask 130048   ;;  %v168_v11 = vld [vmem:[%s946_s2 + $0x10] sm:$0xff]  ;;  %s737_s17 = smov 32   ;;  %vm259_vm6 = vcmask 261120  }
  0x27   :  { %617 = vmatprep.subr.bf16.mxu1 %v735_v0  ;;  %619 = vmatprep.mubr.msk.bf16.mxu1 %vm736_vm0, %v735_v0  ;;  %v172_v6 = vpack.c.bf16 %v167_v5, %v166_v3  ;;  %v821_v7 = vld [vmem:[#allocation2] sm:$0xff]  ;;  %v823_v8 = vld [vmem:[#allocation2 + $0x8] sm:$0xff]  ;;  %v169_v12 = vld [vmem:[%s946_s2 + $0x18] sm:$0xff]  ;;  %v105_v49 = vshrl.u32 %v104_v48, 7  ;;  %s738_s26 = smov 96  }
  0x28   :  { %604 = vmatpush3.bf16.msra.mxu0 %v177_v4  ;;  %v58_v9 = vsel %vm57_vm1, %v821_v7, 0.0  ;;  %v61_v10 = vsel %vm57_vm1, %v823_v8, 0.0  ;;  %v173_v13 = vpack.c.bf16 %v169_v12, %v168_v11  ;;  %v842_v14 = vld [vmem:[#allocation4] sm:$0xff]  ;;  %v844_v15 = vld [vmem:[#allocation4 + $0x8] sm:$0xff]  ;;  %v170_v18 = vld [vmem:[%s946_s2 + $0x20] sm:$0xff] }
  0x29   :  { %59 = vadd.xlane.f32.xlu0 %v58_v9  ;;  %645 = vmatprep.subr.bf16.mxu0 %v735_v0  ;;  %v113_v16 = vsel %vm57_vm1, %v842_v14, 0.0  ;;  %v116_v17 = vsel %vm57_vm1, %v844_v15, 0.0  ;;  %v171_v19 = vld [vmem:[%s946_s2 + $0x28] sm:$0xff]  ;;  %v106_v50 = vsub.s32 0, %v105_v49  ;;  %v181_v11 = vld [vmem:[%s949_s5 + $0x18] sm:$0xff] }
  0x2a   :  { %v174_v21 = vpack.c.bf16 %v171_v19, %v170_v18 }
  0x2b   :  { %606 = vmatmul.mubr.msk.bf16.vlgmr.msra.gmra.mrb[0].mxu0 %vm57_vm1, %v172_v6 }
  0x2c   :  { %609 = vmatprep.mubr.msk.bf16.mxu0 %vm736_vm0, %v735_v0 }
  0x2d   :  { %62 = vadd.xlane.f32.xlu0 %v61_v10  ;;  %v180_v10 = vld [vmem:[%s949_s5 + $0x10] sm:$0xff] }
  0x2e   :  { %v183_v12 = vpack.c.bf16 %v181_v11, %v180_v10 }
  0x31   :  { %114 = vadd.xlane.f32.xlu0 %v113_v16 }
  0x33   :  { %610 = vmatmul.mubr.msk.bf16.gmra.mrb[4].mxu0 %vm57_vm1, %v173_v13  ;;  %v579_v13 = vld [vmem:[%s948_s4] ss:$0 sm:$0xff] }
  0x34   :  { %613 = vmatprep.mubr.msk.bf16.mxu0 %vm736_vm0, %v735_v0 }
  0x35   :  { %117 = vadd.xlane.f32.xlu0 %v116_v17 }
  0x3b   :  { %614 = vmatmul.mubr.msk.bf16.gmra.mrb[8].mxu0 %vm57_vm1, %v174_v21 }
  0x3c   :  { %647 = vmatprep.mubr.msk.bf16.mxu0 %vm736_vm0, %v735_v0 }
  0xb6   :  { %v60_v30 = vpop.xlane.xlu0 %59 }
  0xb7   :  { %675 = vrsqrt.f32 %v60_v30  ;;  %vm64_vm2 = vcmp.gt.f32.partialorder %v60_v30, 0.0 }
  0xba   :  { %v63_v31 = vpop.xlane.xlu0 %62 }
  0xbb   :  { %677 = vrsqrt.f32 %v63_v31  ;;  %vm65_vm3 = vcmp.gt.f32.partialorder %v63_v31, 0.0 }
  0xbe   :  { %v115_v36 = vpop.xlane.xlu0 %114 }
  0xbf   :  { %679 = vrsqrt.f32 %v115_v36  ;;  %vm119_vm4 = vcmp.gt.f32.partialorder %v115_v36, 0.0 }
  0xc1   :  { %v676_v32 = vpop.eup %675 }
  0xc2   :  { %v68_v33 = vsel %vm64_vm2, %v676_v32, 0.0  ;;  %v118_v37 = vpop.xlane.xlu0 %117 }
  0xc3   :  { %681 = vrsqrt.f32 %v118_v37  ;;  %vm120_vm5 = vcmp.gt.f32.partialorder %v118_v37, 0.0  ;;  %v70_v52 = vmul.f32 %v68_v33, %v821_v7  ;;  %v178_v7 = vld [vmem:[%s949_s5] sm:$0xff] }
  0xc5   :  { %v678_v34 = vpop.eup %677 }
  0xc6   :  { %v69_v35 = vsel %vm65_vm3, %v678_v34, 0.0 }
  0xc7   :  { %v71_v53 = vmul.f32 %v69_v35, %v823_v8  ;;  %v179_v8 = vld [vmem:[%s949_s5 + $0x8] sm:$0xff] }
  0xc8   :  { %v182_v9 = vpack.c.bf16 %v179_v8, %v178_v7 }
  0xc9   :  { %v680_v38 = vpop.eup %679 }
  0xca   :  { %v123_v39 = vsel %vm119_vm4, %v680_v38, 0.0 }
  0xcb   :  { %127 = vxpose.xlu0.b32.start [1/2] (short) (narrow) %v123_v39, 8  ;;  %v125_v58 = vmul.f32 %v123_v39, %v842_v14 }
  0xcd   :  { %v682_v40 = vpop.eup %681 }
  0xce   :  { %v124_v41 = vsel %vm120_vm5, %v682_v40, 0.0 }
  0xcf   :  { %128 = vxpose.xlu0.b32.end [2/2] (short) (narrow) %v124_v41, 8  ;;  %v126_v59 = vmul.f32 %v124_v41, %v844_v15 }
  0xfe   :  { %v228_v20 = vpop.f32.mrb[0].mxu0 }
  0xff   :  { %v607_v22 = vpop.f32.mrb[1].mxu0 }
 0x100   :  { %v231_v23 = vpop.f32.mrb[2].mxu0 }
 0x101   :  { %v608_v24 = vpop.f32.mrb[3].mxu0 }
 0x106   :  { %v236_v25 = vpop.f32.mrb[4].mxu0 }
 0x107   :  { %v611_v26 = vpop.f32.mrb[5].mxu0 }
 0x108   :  { %v239_v27 = vpop.f32.mrb[6].mxu0 }
 0x109   :  { %v665_v28 = vpack.i.bf16 %v239_v27, %v236_v25  ;;  %v612_v29 = vpop.f32.mrb[7].mxu0 }
 0x10b   :  { %666 = vrot.lane.b32.xlu1 %v665_v28, %s737_s17 }
 0x10e   :  { %v244_v60 = vpop.f32.mrb[8].mxu0 }
 0x10f   :  { %v615_v61 = vpop.f32.mrb[9].mxu0 }
 0x110   :  { %v247_v1 = vpop.f32.mrb[10].mxu0 }
 0x111   :  { %v307_v2 = vpack.c.bf16 %v247_v1, %v244_v60  ;;  %v616_v3 = vpop.f32.mrb[11].mxu0  ;;  %v585_v60 = vld [vmem:[%s950_s6] ss:$0 sm:$0xff] }
 0x134   :  { %72 = vxpose.xlu1.b32.start [1/2] (short) (narrow) %v68_v33, 8 }
 0x138   :  { %73 = vxpose.xlu1.b32.end [2/2] (short) (narrow) %v69_v35, 8 }
 0x14b   :  { %v143_v62 = vpop.trf.xlu0 }
 0x14c   :  { %v162_v63 = vrot.slane %v143_v62, %v106_v50 }
 0x14e   :  { %v163_v4 = vmul.f32 %v162_v63, %v125_v58  ;;  %v164_v5 = vmul.f32 %v162_v63, %v126_v59 }
 0x150   :  { %v873_v6 = vpack.c.bf16 %v164_v5, %v163_v4 }
 0x17d   :  { %v667_v42 = vpop.permute.xlu1 %666 }
 0x17e   :  { %v669_v43 = vunpack.i.h.bf16 %v667_v42  ;;  %v668_v44 = vunpack.i.l.bf16 %v667_v42 }
 0x180   :  { %v260_v45 = vsel %vm259_vm6, %v228_v20, %v668_v44  ;;  %v261_v46 = vsel %vm259_vm6, %v231_v23, %v669_v43 }
 0x181   :  { %v262_v47 = vpack.c.bf16 %v261_v46, %v260_v45 }
 0x183   :  { %618 = vmatpush3.bf16.msra.mxu1 %v262_v47 }
 0x184   :  { %623 = vmatprep.subr.bf16.mxu1 %v735_v0 }
 0x1b4   :  { %v88_v51 = vpop.trf.xlu1 }
 0x1b5   :  { %v107_v54 = vrot.slane %v88_v51, %v106_v50 }
 0x1b7   :  { %v108_v55 = vmul.f32 %v107_v54, %v70_v52  ;;  %v109_v56 = vmul.f32 %v107_v54, %v71_v53 }
 0x1b9   :  { %v865_v57 = vpack.c.bf16 %v109_v56, %v108_v55 }
 0x1bb   :  { %620 = vmatmul.mubr.msk.bf16.vlgmr.msra.gmra.mrb[0].mxu1 %vm57_vm1, %v865_v57 }
 0x1bc   :  { %625 = vmatprep.mubr.msk.bf16.mxu1 %vm736_vm0, %v735_v0  ;;  %624 = vmatpush3.bf16.msra.mxu1 %v307_v2 }
 0x1bd   :  { %629 = vmatprep.subr.bf16.mxu1 %v735_v0 }
 0x1c3   :  { %626 = vmatmul.mubr.msk.bf16.vlgmr.msra.gmra.mrb[4].mxu1 %vm57_vm1, %v873_v6 }
 0x1c4   :  { %633 = vmatprep.mubr.msk.bf16.mxu1 %vm736_vm0, %v735_v0  ;;  %630 = vmatpush3.bf16.msra.mxu1 %v182_v9 }
 0x1c5   :  { %631 = vmatprep.subr.bf16.mxu1 %v735_v0 }
 0x1c8   :  { %632 = vmatpush3.bf16.msra.mxu1 %v183_v12 }
 0x28e   :  { %v300_v14 = vpop.f32.mrb[0].mxu1 }
 0x28f   :  { %v366_v15 = vadd.f32 %v579_v13, %v300_v14  ;;  %354 = vrot.lane.b32.xlu1 %v300_v14, %s738_s26  ;;  %v621_v16 = vpop.f32.mrb[1].mxu1 }
 0x290   :  { %v303_v17 = vpop.f32.mrb[2].mxu1 }
 0x291   :  { %v367_v18 = vadd.f32 %v579_v13, %v303_v17  ;;  %v622_v19 = vpop.f32.mrb[3].mxu1  ;;  %356 = vrot.lane.b32.xlu0 %v303_v17, %s738_s26  ;;  %v372_v20 = vmax.f32 %v366_v15, 0.0 }
 0x293   :  { %v373_v21 = vmax.f32 %v367_v18, 0.0 }
 0x295   :  { %v378_v22 = vpack.c.bf16 %v373_v21, %v372_v20 }
 0x296   :  { %v345_v23 = vpop.f32.mrb[4].mxu1 }
 0x297   :  { %634 = vmatmul.mubr.msk.bf16.vlgmr.msra.gmra.mrb[8].mxu1 %vm259_vm6, %v378_v22  ;;  %v370_v24 = vadd.f32 %v579_v13, %v345_v23  ;;  %v627_v25 = vpop.f32.mrb[5].mxu1 }
 0x298   :  { %637 = vmatprep.mubr.msk.bf16.mxu1 %vm736_vm0, %v735_v0  ;;  %v348_v26 = vpop.f32.mrb[6].mxu1 }
 0x299   :  { %v376_v27 = vmax.f32 %v370_v24, 0.0  ;;  %v371_v28 = vadd.f32 %v579_v13, %v348_v26  ;;  %v628_v29 = vpop.f32.mrb[7].mxu1 }
 0x29b   :  { %v377_v30 = vmax.f32 %v371_v28, 0.0 }
 0x29d   :  { %v380_v31 = vpack.c.bf16 %v377_v30, %v376_v27 }
 0x301   :  { %v355_v32 = vpop.permute.xlu1 %354 }
 0x302   :  { %v368_v33 = vadd.f32 %v579_v13, %v355_v32 }
 0x303   :  { %v357_v34 = vpop.permute.xlu0 %356 }
 0x304   :  { %v369_v35 = vadd.f32 %v579_v13, %v357_v34  ;;  %v374_v36 = vmax.f32 %v368_v33, 0.0 }
 0x306   :  { %v375_v37 = vmax.f32 %v369_v35, 0.0 }
 0x308   :  { %v379_v38 = vpack.c.bf16 %v375_v37, %v374_v36 }
 0x30a   :  { %638 = vmatmul.mubr.msk.bf16.gmra.mrb[12].mxu1 %vm259_vm6, %v379_v38 }
 0x30b   :  { %641 = vmatprep.mubr.msk.bf16.mxu1 %vm736_vm0, %v735_v0 }
 0x312   :  { %642 = vmatmul.mubr.msk.bf16.gmra.mrb[16].mxu1 %vm259_vm6, %v380_v31 }
 0x36a   :  { %v425_v39 = vpop.f32.mrb[8].mxu1 }
 0x36b   :  { %v635_v40 = vpop.f32.mrb[9].mxu1 }
 0x36c   :  { %v428_v41 = vpop.f32.mrb[10].mxu1 }
 0x36d   :  { %v636_v42 = vpop.f32.mrb[11].mxu1 }
 0x3dd   :  { %v433_v43 = vpop.f32.mrb[12].mxu1 }
 0x3de   :  { %v639_v44 = vpop.f32.mrb[13].mxu1 }
 0x3df   :  { %v436_v45 = vpop.f32.mrb[14].mxu1 }
 0x3e0   :  { %v670_v46 = vpack.i.bf16 %v436_v45, %v433_v43  ;;  %v640_v47 = vpop.f32.mrb[15].mxu1 }
 0x3e2   :  { %671 = vrot.lane.b32.xlu1 %v670_v46, %s737_s17 }
 0x3e5   :  { %v441_v48 = vpop.f32.mrb[16].mxu1 }
 0x3e6   :  { %v643_v49 = vpop.f32.mrb[17].mxu1 }
 0x3e7   :  { %v444_v50 = vpop.f32.mrb[18].mxu1 }
 0x3e8   :  { %v500_v51 = vpack.c.bf16 %v444_v50, %v441_v48  ;;  %v644_v52 = vpop.f32.mrb[19].mxu1 }
 0x454   :  { %v672_v53 = vpop.permute.xlu1 %671 }
 0x455   :  { %v674_v54 = vunpack.i.h.bf16 %v672_v53  ;;  %v673_v55 = vunpack.i.l.bf16 %v672_v53 }
 0x457   :  { %v457_v56 = vsel %vm259_vm6, %v428_v41, %v674_v54  ;;  %v456_v58 = vsel %vm259_vm6, %v425_v39, %v673_v55 }
 0x458   :  { %v458_v59 = vpack.c.bf16 %v457_v56, %v456_v58 }
 0x45a   :  { %646 = vmatpush3.bf16.msra.mxu0 %v458_v59 }
 0x45b   :  { %651 = vmatprep.subr.bf16.mxu0 %v735_v0 }
 0x45d   :  { %648 = vmatmul.mubr.msk.bf16.vlgmr.msra.gmra.mrb[12].mxu0 %vm57_vm1, %v865_v57 }
 0x45e   :  { %652 = vmatpush3.bf16.msra.mxu0 %v500_v51  ;;  %653 = vmatprep.mubr.msk.bf16.mxu0 %vm736_vm0, %v735_v0 }
 0x465   :  { %654 = vmatmul.mubr.msk.bf16.vlgmr.msra.gmra.mrb[16].mxu0 %vm57_vm1, %v873_v6 }
 0x530   :  { %v493_v61 = vpop.f32.mrb[12].mxu0 }
 0x531   :  { %v556_v62 = vadd.f32 %v585_v60, %v493_v61  ;;  %544 = vrot.lane.b32.xlu1 %v493_v61, %s738_s26  ;;  %v649_v63 = vpop.f32.mrb[13].mxu0 }
 0x532   :  { %v496_v1 = vpop.f32.mrb[14].mxu0 }
 0x533   :  { %562 = vst.msk [vmem:[%s951_s7] sm:$0xff] %vm259_vm6, %v556_v62  ;;  %v557_v57 = vadd.f32 %v585_v60, %v496_v1  ;;  %v650_v0 = vpop.f32.mrb[15].mxu0 }
 0x535   :  { %563 = vst.msk [vmem:[%s951_s7 + $0x8] sm:$0xff] %vm259_vm6, %v557_v57  ;;  %546 = vrot.lane.b32.xlu1 %v496_v1, %s738_s26 }
 0x538   :  { %v535_v2 = vpop.f32.mrb[16].mxu0 }
 0x539   :  { %v560_v3 = vadd.f32 %v585_v60, %v535_v2  ;;  %v655_v4 = vpop.f32.mrb[17].mxu0 }
 0x53a   :  { %v538_v5 = vpop.f32.mrb[18].mxu0 }
 0x53b   :  { %566 = vst.msk [vmem:[%s951_s7 + $0x20] sm:$0xff] %vm259_vm6, %v560_v3  ;;  %v561_v6 = vadd.f32 %v585_v60, %v538_v5  ;;  %v656_v7 = vpop.f32.mrb[19].mxu0 }
 0x53d   :  { %567 = vst.msk [vmem:[%s951_s7 + $0x28] sm:$0xff] %vm259_vm6, %v561_v6 }
 0x5a3   :  { %v545_v8 = vpop.permute.xlu1 %544 }
 0x5a4   :  { %v558_v9 = vadd.f32 %v585_v60, %v545_v8 }
 0x5a6   :  { %564 = vst.msk [vmem:[%s951_s7 + $0x10] sm:$0xff] %vm259_vm6, %v558_v9 }
 0x5a7   :  { %v547_v10 = vpop.permute.xlu1 %546 }
 0x5a8   :  { %v559_v11 = vadd.f32 %v585_v60, %v547_v10 }
 0x5aa   :  { %565 = vst.msk [vmem:[%s951_s7 + $0x18] sm:$0xff] %vm259_vm6, %v559_v11 }
 0x5ab   :  { %572 = vsyncpa [#allocation3], 1 }
 0x5ac   :  { %573 = vsyncpa [#allocation5], 1 }

</bundles_post_ra>
